<compile_context>
chip_gen: v5e
topology: v5e:2x2
jax: 0.10.0
libtpu: 0.0.40
codegen_flags: <defaults>
</compile_context>

<pallas_src>
import functools

import jax
import jax.numpy as jnp
from jax.experimental import pallas as pl
from jax.experimental.pallas import tpu as pltpu

HIDDEN = 256


def _critic_kernel(s_ref, a_ref, w1s_ref, w1a_ref, b1_ref, w2_ref, b2_ref,
                   w3r_ref, b3_ref, o_ref):
    # s:(TB,S) f32   a:(TB,A) f32
    # w1s:(S,256) bf16  w1a:(A,256) bf16  b1:(1,256) f32
    # w2:(256,256) bf16 b2:(1,256) f32
    # w3r:(1,256) f32   b3:(1,1) f32      o:(TB,1) f32
    s = s_ref[...].astype(jnp.bfloat16)
    a = a_ref[...].astype(jnp.bfloat16)
    # Fused concat: x @ W1 == state @ W1[:S] + action @ W1[S:]
    h1 = (jnp.dot(s, w1s_ref[...], preferred_element_type=jnp.float32)
          + jnp.dot(a, w1a_ref[...], preferred_element_type=jnp.float32)
          + b1_ref[...])
    h1 = jnp.maximum(h1, 0.0)  # f32 elementwise
    h2 = jnp.dot(h1.astype(jnp.bfloat16), w2_ref[...],
                 preferred_element_type=jnp.float32) + b2_ref[...]
    h2 = jnp.maximum(h2, 0.0)
    # Layer 3 (256 -> 1): VPU multiply + lane reduction (avoids an N=1 MXU matmul
    # and the padded (256,128) weight tile it would require).
    q = jnp.sum(h2 * w3r_ref[...], axis=-1, keepdims=True) + b3_ref[...]
    # (B,1) output is fine at small B; for B >= ~1K a lane-dense padded output
    # tile would avoid masked partial stores.
    o_ref[...] = q.astype(o_ref.dtype)


def _round_up(x, m):
    return ((x + m - 1) // m) * m


@jax.jit
def critic_forward(state, action, kernel_params):
    """Pallas implementation of Critic.forward(state, action)."""
    w1s, w1a, b1, w2, b2, w3r, b3 = kernel_params
    B, S = state.shape
    A = action.shape[1]

    state = state.astype(jnp.float32)
    action = action.astype(jnp.float32)

    # Batch tile: multiple of 8 sublanes, capped so tiles stay tiny vs VMEM
    # (well under v7x's 64 MiB physical / 32 MiB scoped limit).
    TB = min(256, _round_up(B, 8))
    B_pad = _round_up(B, TB)
    if B_pad != B:
        state = jnp.pad(state, ((0, B_pad - B), (0, 0)))
        action = jnp.pad(action, ((0, B_pad - B), (0, 0)))
    grid = (B_pad // TB,)

    flops = 2 * B_pad * ((S + A) * HIDDEN + HIDDEN * HIDDEN + HIDDEN)
    weight_bytes = sum(int(p.size) * p.dtype.itemsize for p in kernel_params)
    bytes_accessed = weight_bytes + B_pad * (S + A + 1) * 4

    out = pl.pallas_call(
        _critic_kernel,
        out_shape=jax.ShapeDtypeStruct((B_pad, 1), jnp.float32),
        grid=grid,
        in_specs=[
            pl.BlockSpec((TB, S), lambda i: (i, 0)),          # state tile
            pl.BlockSpec((TB, A), lambda i: (i, 0)),          # action tile
            pl.BlockSpec((S, HIDDEN), lambda i: (0, 0)),      # w1[:S]  (bf16)
            pl.BlockSpec((A, HIDDEN), lambda i: (0, 0)),      # w1[S:]  (bf16)
            pl.BlockSpec((1, HIDDEN), lambda i: (0, 0)),      # b1
            pl.BlockSpec((HIDDEN, HIDDEN), lambda i: (0, 0)), # w2      (bf16)
            pl.BlockSpec((1, HIDDEN), lambda i: (0, 0)),      # b2
            pl.BlockSpec((1, HIDDEN), lambda i: (0, 0)),      # w3 row
            pl.BlockSpec((1, 1), lambda i: (0, 0)),           # b3
        ],
        out_specs=pl.BlockSpec((TB, 1), lambda i: (i, 0)),
        compiler_params=pltpu.CompilerParams(
            dimension_semantics=("parallel",)),
        cost_estimate=pl.CostEstimate(
            flops=flops, transcendentals=0, bytes_accessed=bytes_accessed),
    )(state, action, w1s, w1a, b1, w2, b2, w3r, b3)
    return out[:B]


def init_critic_params(key, state_dim, action_dim, hidden=HIDDEN):
    """f32 'master' params matching nn.Linear default init:
    U(-1/sqrt(fan_in), 1/sqrt(fan_in)) for weights and biases.
    Weights stored transposed (in, out) so the kernel computes x @ W."""
    dims = [(state_dim + action_dim, hidden), (hidden, hidden), (hidden, 1)]
    params = []
    for fan_in, fan_out in dims:
        key, kw, kb = jax.random.split(key, 3)
        bound = 1.0 / (fan_in ** 0.5)
        w = jax.random.uniform(kw, (fan_in, fan_out), jnp.float32, -bound, bound)
        b = jax.random.uniform(kb, (1, fan_out), jnp.float32, -bound, bound)
        params.extend([w, b])
    return tuple(params)  # (w1, b1, w2, b2, w3, b3)


def prepare_kernel_params(master_params, state_dim):
    """One-time (outside the hot path) conversion to the kernel layout:
    w1 split at state_dim, hot matmul weights in bf16, biases f32,
    w3 stored as a (1,256) f32 row for the VPU reduce."""
    w1, b1, w2, b2, w3, b3 = master_params
    w1s = w1[:state_dim].astype(jnp.bfloat16)
    w1a = w1[state_dim:].astype(jnp.bfloat16)
    w2b = w2.astype(jnp.bfloat16)
    w3r = w3.reshape(1, -1).astype(jnp.float32)
    return (w1s, w1a, b1, w2b, b2, w3r, b3)


def critic_reference(state, action, master_params):
    """Pure-f32 JAX reference (matches the PyTorch module semantics)."""
    w1, b1, w2, b2, w3, b3 = master_params
    x = jnp.concatenate([state, action], axis=1)
    h1 = jnp.maximum(x @ w1 + b1, 0.0)
    h2 = jnp.maximum(h1 @ w2 + b2, 0.0)
    return h2 @ w3 + b3


def critic_reference_bf16(state, action, kernel_params):
    """Emulates the kernel's bf16-input / f32-accumulate matmuls in plain JAX."""
    w1s, w1a, b1, w2, b2, w3r, b3 = kernel_params
    f = lambda t: t.astype(jnp.bfloat16).astype(jnp.float32)
    h1 = jnp.maximum(f(state) @ f(w1s) + f(action) @ f(w1a) + b1, 0.0)
    h2 = jnp.maximum(f(h1) @ f(w2) + b2, 0.0)
    return jnp.sum(h2 * w3r, axis=-1, keepdims=True) + b3


if __name__ == "__main__":
    B, STATE_DIM, ACTION_DIM = 8, 12, 4

    key = jax.random.PRNGKey(0)
    kp, ks, ka = jax.random.split(key, 3)
    master_params = init_critic_params(kp, STATE_DIM, ACTION_DIM)
    kernel_params = prepare_kernel_params(master_params, STATE_DIM)
    state = jax.random.normal(ks, (B, STATE_DIM), jnp.float32)
    action = jax.random.normal(ka, (B, ACTION_DIM), jnp.float32)

    q = critic_forward(state, action, kernel_params)
    jax.block_until_ready(q)
    assert q.shape == (B, 1), q.shape

    # Tight check against a bf16-emulated reference (same rounding as the kernel).
    q_bf16_ref = critic_reference_bf16(state, action, kernel_params)
    assert jnp.allclose(q, q_bf16_ref, atol=1e-3, rtol=1e-3), "mismatch vs bf16 reference"

    # Loose check against the pure-f32 module semantics (bf16 weight quantization).
    q_f32_ref = critic_reference(state, action, master_params)
    assert jnp.allclose(q, q_f32_ref, atol=5e-2, rtol=5e-2), "mismatch vs f32 reference"

    print("KERNEL_OK")
</pallas_src>

<mosaic_0001>
module attributes {stable_mosaic.version = 11 : i64} {
  func.func @_critic_kernel(%arg0: i32, %arg1: memref<8x12xf32, #tpu.memory_space<vmem>>, %arg2: memref<8x4xf32, #tpu.memory_space<vmem>>, %arg3: memref<12x256xbf16, #tpu.memory_space<vmem>>, %arg4: memref<4x256xbf16, #tpu.memory_space<vmem>>, %arg5: memref<1x256xf32, #tpu.memory_space<vmem>>, %arg6: memref<256x256xbf16, #tpu.memory_space<vmem>>, %arg7: memref<1x256xf32, #tpu.memory_space<vmem>>, %arg8: memref<1x256xf32, #tpu.memory_space<vmem>>, %arg9: memref<1x1xf32, #tpu.memory_space<vmem>>, %arg10: memref<8x1xf32, #tpu.memory_space<vmem>>) attributes {dimension_semantics = [#tpu.dimension_semantics<parallel>], iteration_bounds = array<i64: 1>, scalar_prefetch = 0 : i64, scratch_operands = 0 : i64, tpu.core_type = #tpu.core_type<tc>, window_params = [{transform_indices = @transform_0, window_bounds = array<i64: 8, 12>}, {transform_indices = @transform_1, window_bounds = array<i64: 8, 4>}, {pipeline_mode = #tpu.pipeline_mode<synchronous>, transform_indices = @transform_2, window_bounds = array<i64: 12, 256>}, {pipeline_mode = #tpu.pipeline_mode<synchronous>, transform_indices = @transform_3, window_bounds = array<i64: 4, 256>}, {pipeline_mode = #tpu.pipeline_mode<synchronous>, transform_indices = @transform_4, window_bounds = array<i64: 1, 256>}, {pipeline_mode = #tpu.pipeline_mode<synchronous>, transform_indices = @transform_5, window_bounds = array<i64: 256, 256>}, {pipeline_mode = #tpu.pipeline_mode<synchronous>, transform_indices = @transform_6, window_bounds = array<i64: 1, 256>}, {pipeline_mode = #tpu.pipeline_mode<synchronous>, transform_indices = @transform_7, window_bounds = array<i64: 1, 256>}, {pipeline_mode = #tpu.pipeline_mode<synchronous>, transform_indices = @transform_8, window_bounds = array<i64: 1, 1>}, {transform_indices = @transform_9, window_bounds = array<i64: 8, 1>}]} {
    %c0 = arith.constant 0 : index
    %c0_0 = arith.constant 0 : index
    %0 = vector.load %arg1[%c0, %c0_0] : memref<8x12xf32, #tpu.memory_space<vmem>>, vector<8x12xf32>
    %1 = arith.truncf %0 : vector<8x12xf32> to vector<8x12xbf16>
    %c0_1 = arith.constant 0 : index
    %c0_2 = arith.constant 0 : index
    %2 = vector.load %arg2[%c0_1, %c0_2] : memref<8x4xf32, #tpu.memory_space<vmem>>, vector<8x4xf32>
    %3 = arith.truncf %2 : vector<8x4xf32> to vector<8x4xbf16>
    %c0_3 = arith.constant 0 : index
    %c0_4 = arith.constant 0 : index
    %4 = vector.load %arg3[%c0_3, %c0_4] : memref<12x256xbf16, #tpu.memory_space<vmem>>, vector<12x256xbf16>
    %cst = arith.constant dense<0.000000e+00> : vector<8x256xf32>
    %5 = tpu.matmul %1, %4, %cst {dimension_numbers = #tpu.dot_dimension_numbers<[1], [0], [0], [1], [0, 0, 1, 1], [], []>} : vector<8x12xbf16>, vector<12x256xbf16>, vector<8x256xf32> -> vector<8x256xf32>
    %c0_5 = arith.constant 0 : index
    %c0_6 = arith.constant 0 : index
    %6 = vector.load %arg4[%c0_5, %c0_6] : memref<4x256xbf16, #tpu.memory_space<vmem>>, vector<4x256xbf16>
    %cst_7 = arith.constant dense<0.000000e+00> : vector<8x256xf32>
    %7 = tpu.matmul %3, %6, %cst_7 {dimension_numbers = #tpu.dot_dimension_numbers<[1], [0], [0], [1], [0, 0, 1, 1], [], []>} : vector<8x4xbf16>, vector<4x256xbf16>, vector<8x256xf32> -> vector<8x256xf32>
    %8 = arith.addf %5, %7 : vector<8x256xf32>
    %c0_8 = arith.constant 0 : index
    %c0_9 = arith.constant 0 : index
    %9 = vector.load %arg5[%c0_8, %c0_9] : memref<1x256xf32, #tpu.memory_space<vmem>>, vector<1x256xf32>
    %10 = vector.broadcast %9 : vector<1x256xf32> to vector<8x256xf32>
    %11 = arith.addf %8, %10 : vector<8x256xf32>
    %cst_10 = arith.constant 0.000000e+00 : f32
    %12 = vector.broadcast %cst_10 : f32 to vector<8x256xf32>
    %13 = arith.maximumf %11, %12 : vector<8x256xf32>
    %14 = arith.truncf %13 : vector<8x256xf32> to vector<8x256xbf16>
    %c0_11 = arith.constant 0 : index
    %c0_12 = arith.constant 0 : index
    %15 = vector.load %arg6[%c0_11, %c0_12] : memref<256x256xbf16, #tpu.memory_space<vmem>>, vector<256x256xbf16>
    %cst_13 = arith.constant dense<0.000000e+00> : vector<8x256xf32>
    %16 = tpu.matmul %14, %15, %cst_13 {dimension_numbers = #tpu.dot_dimension_numbers<[1], [0], [0], [1], [0, 0, 1, 1], [], []>} : vector<8x256xbf16>, vector<256x256xbf16>, vector<8x256xf32> -> vector<8x256xf32>
    %c0_14 = arith.constant 0 : index
    %c0_15 = arith.constant 0 : index
    %17 = vector.load %arg7[%c0_14, %c0_15] : memref<1x256xf32, #tpu.memory_space<vmem>>, vector<1x256xf32>
    %18 = vector.broadcast %17 : vector<1x256xf32> to vector<8x256xf32>
    %19 = arith.addf %16, %18 : vector<8x256xf32>
    %cst_16 = arith.constant 0.000000e+00 : f32
    %20 = vector.broadcast %cst_16 : f32 to vector<8x256xf32>
    %21 = arith.maximumf %19, %20 : vector<8x256xf32>
    %c0_17 = arith.constant 0 : index
    %c0_18 = arith.constant 0 : index
    %22 = vector.load %arg8[%c0_17, %c0_18] : memref<1x256xf32, #tpu.memory_space<vmem>>, vector<1x256xf32>
    %23 = vector.broadcast %22 : vector<1x256xf32> to vector<8x256xf32>
    %24 = arith.mulf %21, %23 : vector<8x256xf32>
    %cst_19 = arith.constant dense<0.000000e+00> : vector<8xf32>
    %25 = vector.multi_reduction <add>, %24, %cst_19 [1] : vector<8x256xf32> to vector<8xf32>
    %26 = vector.shape_cast %25 : vector<8xf32> to vector<8x1xf32>
    %c0_20 = arith.constant 0 : index
    %c0_21 = arith.constant 0 : index
    %27 = vector.load %arg9[%c0_20, %c0_21] : memref<1x1xf32, #tpu.memory_space<vmem>>, vector<1x1xf32>
    %28 = vector.broadcast %27 : vector<1x1xf32> to vector<8x1xf32>
    %29 = arith.addf %26, %28 : vector<8x1xf32>
    %c0_22 = arith.constant 0 : index
    %c0_23 = arith.constant 0 : index
    %30 = vector.load %arg10[%c0_22, %c0_23] : memref<8x1xf32, #tpu.memory_space<vmem>>, vector<8x1xf32>
    tpu.vector_store %arg10[%c0_22, %c0_23], %29 {strides = array<i32>} : memref<8x1xf32, #tpu.memory_space<vmem>>, vector<8x1xf32>,
    return
  }
  func.func @transform_0(%arg0: i32) -> (i32, i32) {
    %c0_i32 = arith.constant 0 : i32
    %c0_i32_0 = arith.constant 0 : i32
    return %arg0, %c0_i32 : i32, i32
  }
  func.func @transform_1(%arg0: i32) -> (i32, i32) {
    %c0_i32 = arith.constant 0 : i32
    %c0_i32_0 = arith.constant 0 : i32
    return %arg0, %c0_i32 : i32, i32
  }
  func.func @transform_2(%arg0: i32) -> (i32, i32) {
    %c0_i32 = arith.constant 0 : i32
    %c0_i32_0 = arith.constant 0 : i32
    %c0_i32_1 = arith.constant 0 : i32
    return %c0_i32, %c0_i32_0 : i32, i32
  }
  func.func @transform_3(%arg0: i32) -> (i32, i32) {
    %c0_i32 = arith.constant 0 : i32
    %c0_i32_0 = arith.constant 0 : i32
    %c0_i32_1 = arith.constant 0 : i32
    return %c0_i32, %c0_i32_0 : i32, i32
  }
  func.func @transform_4(%arg0: i32) -> (i32, i32) {
    %c0_i32 = arith.constant 0 : i32
    %c0_i32_0 = arith.constant 0 : i32
    %c0_i32_1 = arith.constant 0 : i32
    return %c0_i32, %c0_i32_0 : i32, i32
  }
  func.func @transform_5(%arg0: i32) -> (i32, i32) {
    %c0_i32 = arith.constant 0 : i32
    %c0_i32_0 = arith.constant 0 : i32
    %c0_i32_1 = arith.constant 0 : i32
    return %c0_i32, %c0_i32_0 : i32, i32
  }
  func.func @transform_6(%arg0: i32) -> (i32, i32) {
    %c0_i32 = arith.constant 0 : i32
    %c0_i32_0 = arith.constant 0 : i32
    %c0_i32_1 = arith.constant 0 : i32
    return %c0_i32, %c0_i32_0 : i32, i32
  }
  func.func @transform_7(%arg0: i32) -> (i32, i32) {
    %c0_i32 = arith.constant 0 : i32
    %c0_i32_0 = arith.constant 0 : i32
    %c0_i32_1 = arith.constant 0 : i32
    return %c0_i32, %c0_i32_0 : i32, i32
  }
  func.func @transform_8(%arg0: i32) -> (i32, i32) {
    %c0_i32 = arith.constant 0 : i32
    %c0_i32_0 = arith.constant 0 : i32
    %c0_i32_1 = arith.constant 0 : i32
    return %c0_i32, %c0_i32_0 : i32, i32
  }
  func.func @transform_9(%arg0: i32) -> (i32, i32) {
    %c0_i32 = arith.constant 0 : i32
    %c0_i32_0 = arith.constant 0 : i32
    return %arg0, %c0_i32 : i32, i32
  }
}

</mosaic_0001>

<bundles_post_ra>
// kernel: critic_forward.1
= control target key start
LH: loop header
LB: loop body
LE: loop exit
PB: predicated region body
PF: predicated region fallthrough
CT: control target
= control target key end

     0   :  { %s769_s0 = inlined_call_operand.vmem [shape: f32[8,12], index: 0, kind: input, shape index: {}]   ;;  %s770_s1 = inlined_call_operand.vmem [shape: f32[8,4], index: 1, kind: input, shape index: {}]   ;;  %s771_s2 = inlined_call_operand.hbm [shape: bf16[12,256], index: 2, kind: input, shape index: {}]   ;;  %s772_s3 = inlined_call_operand.vmem [shape: bf16[4,256], index: 3, kind: input, shape index: {}]   ;;  %s773_s4 = inlined_call_operand.vmem [shape: f32[1,256], index: 4, kind: input, shape index: {}]   ;;  %s774_s5 = inlined_call_operand.hbm [shape: bf16[256,256], index: 5, kind: input, shape index: {}]   ;;  %s775_s6 = inlined_call_operand.vmem [shape: f32[1,256], index: 6, kind: input, shape index: {}]   ;;  %s776_s7 = inlined_call_operand.vmem [shape: f32[1,256], index: 7, kind: input, shape index: {}]   ;;  %s777_s8 = inlined_call_operand.<no memory space> [shape: f32[1,1], index: 8, kind: input, shape index: {}]   ;;  %s778_s9 = inlined_call_operand.vmem [shape: f32[8,1], index: 9, kind: output, shape index: {}]  }
   0x1   :  { %v14_v0 = vstv %s777_s8 }
   0x2   :  { %15 = vst [vmem:[#allocation2] sm:$0x1] %v14_v0 }
   0x3   :  { %16 = vsyncpa [#allocation4], 0  ;;  %s26_s13 = sshll.u32 %s771_s2, 4  ;;  %s27_s13 = int_to_ptr.hbm [resolvable:$true] %s26_s13 }
   0x4   :  { %17 = vsyncpa [#allocation6], 0  ;;  %s677_s14 = smov [#allocation3]   ;;  %s43_s18 = sshll.u32 %s774_s5, 4  ;;  %s44_s18 = int_to_ptr.hbm [resolvable:$true] %s43_s18 }
   0x5   :  { %s28_s15 = sshll.u32 %s677_s14, 4  ;;  %s678_s19 = smov 128   ;;  %s29_s15 = int_to_ptr.vmem [resolvable:$true] %s28_s15 }
   0x6   :  { %s679_s20 = smov 8   ;;  %s680_s8 = smov [#allocation5]  }
   0x7   :  { %34 = dma.hbm_to_vmem [thread:$0]  %s27_s13, 256, %s29_s15, [#allocation4], %s678_s19, %s678_s19, %s679_s20  }
   0x8   :  { %s45_s21 = sshll.u32 %s680_s8, 4  ;;  %s46_s21 = int_to_ptr.vmem [resolvable:$true] %s45_s21 }
   0x9   :  { %51 = dma.hbm_to_vmem [thread:$0]  %s44_s18, 4096, %s46_s21, [#allocation6], %s678_s19, %s678_s19, %s679_s20  }
   0xa   :  { %673 = dma.done.wait [#allocation4], 256  }
   0xb   :  { %674 = vsyncadd [#allocation4], 4294967040 }
   0xc   :  { %675 = dma.done.wait [#allocation6], 4096  }
   0xd   :  { %676 = vsyncadd [#allocation6], 4294963200  ;;  %vm125_vm0 = vcmask 1045504   ;;  %v450_v1 = vld [vmem:[#allocation3] sm:$0xf]  ;;  %v67_v6 = vld [vmem:[%s769_s0] sm:$0xff] }
   0xe   :  { %v587_v2 = vld [vmem:[#allocation3 + $0x4] sm:$0x30]  ;;  %v586_v3 = vld [vmem:[#allocation3 + $0x4] sm:$0xf]  ;;  %v452_v5 = vld [vmem:[#allocation3 + $0x8] sm:$0x30]  ;;  %v68_v10 = vpack.c.bf16 %v67_v6, %v67_v6 }
   0xf   :  { %v451_v4 = vor.u32 %v587_v2, %v450_v1  ;;  %v73_v7 = vld [vmem:[%s772_s3] sm:$0xf]  ;;  %v455_v8 = vor.u32 %v586_v3, %v452_v5  ;;  %v516_v11 = vld [vmem:[#allocation5 + $0x70] sm:$0xf]  ;;  %v603_v12 = vld [vmem:[#allocation5 + $0x74] sm:$0xf0] }
  0x10   :  { %75 = vst [vmem:[#allocation1] ss:$4 sm:$0xff] %v73_v7  ;;  %v580_v13 = vld [vmem:[#allocation5 + $0xf0] sm:$0xf]  ;;  %vm121_vm1 = vcmask 97280   ;;  %vm82_vm2 = vcmask 1041408   ;;  %v517_v28 = vor.u32 %v603_v12, %v516_v11 }
  0x11   :  { %v127_v9 = vsel %vm125_vm0, %v451_v4, 0  ;;  %v130_v14 = vsel %vm125_vm0, %v455_v8, 0  ;;  %v619_v15 = vld [vmem:[#allocation5 + $0xf4] sm:$0xf0]  ;;  %v602_v16 = vld [vmem:[#allocation5 + $0x74] sm:$0xf] }
  0x12   :  { %139 = vmatpush.bf16.msra.mxu2 %v127_v9  ;;  %152 = vmatpush.bf16.msra.mxu3 %v130_v14  ;;  %v518_v17 = vld [vmem:[#allocation5 + $0x78] sm:$0xf0]  ;;  %v618_v18 = vld [vmem:[#allocation5 + $0xf4] sm:$0xf]  ;;  %v69_v20 = vld [vmem:[%s770_s1] sm:$0xff]  ;;  %v581_v29 = vor.u32 %v619_v15, %v580_v13  ;;  %vm78_vm3 = vcmask 31744  }
  0x13   :  { %v582_v19 = vld [vmem:[#allocation5 + $0xf8] sm:$0xf0]  ;;  %v521_v21 = vor.u32 %v602_v16, %v518_v17  ;;  %v508_v23 = vld [vmem:[#allocation5 + $0x60] sm:$0xf]  ;;  %v601_v24 = vld [vmem:[#allocation5 + $0x64] sm:$0xf0]  ;;  %v70_v39 = vpack.c.bf16 %v69_v20, %v69_v20 }
  0x14   :  { %v585_v22 = vor.u32 %v618_v18, %v582_v19  ;;  %v572_v25 = vld [vmem:[#allocation5 + $0xe0] sm:$0xf]  ;;  %v600_v26 = vld [vmem:[#allocation5 + $0x64] sm:$0xf]  ;;  %v510_v27 = vld [vmem:[#allocation5 + $0x68] sm:$0xf0]  ;;  %v509_v42 = vor.u32 %v601_v24, %v508_v23 }
  0x15   :  { %456 = vmatmul.msk.bf16.vlgmr.msra.gmra.mxu2 %vm121_vm1, %v68_v10  ;;  %457 = vmatmul.msk.bf16.vlgmr.msra.gmra.mxu3 %vm121_vm1, %v68_v10  ;;  %v617_v30 = vld [vmem:[#allocation5 + $0xe4] sm:$0xf0]  ;;  %v616_v31 = vld [vmem:[#allocation5 + $0xe4] sm:$0xf]  ;;  %v574_v32 = vld [vmem:[#allocation5 + $0xe8] sm:$0xf0]  ;;  %v513_v35 = vor.u32 %v600_v26, %v510_v27 }
  0x16   :  { %394 = vmatpush.bf16.msrb.mxu2 %v521_v21  ;;  %407 = vmatpush.bf16.msrb.mxu3 %v585_v22  ;;  %v577_v36 = vor.u32 %v616_v31, %v574_v32  ;;  %v598_v40 = vld [vmem:[#allocation5 + $0x54] sm:$0xf]  ;;  %v502_v41 = vld [vmem:[#allocation5 + $0x58] sm:$0xf0]  ;;  %v573_v43 = vor.u32 %v617_v30, %v572_v25  ;;  %v500_v44 = vld [vmem:[#allocation5 + $0x50] sm:$0xf] }
  0x17   :  { %v76_v33 = vld.sshfl [vmem:[#allocation1] sm:$0xff pattern:$0x73625140]  ;;  %v77_v34 = vld.sshfl [vmem:[#allocation1 + $0x8] sm:$0xff pattern:$0x73625140]  ;;  %v505_v50 = vor.u32 %v598_v40, %v502_v41 }
  0x18   :  { %v83_v37 = vsel %vm82_vm2, %v76_v33, 0  ;;  %v85_v38 = vsel %vm82_vm2, %v77_v34, 0  ;;  %v614_v45 = vld [vmem:[#allocation5 + $0xd4] sm:$0xf]  ;;  %v566_v46 = vld [vmem:[#allocation5 + $0xd8] sm:$0xf0] }
  0x19   :  { %94 = vmatpush.bf16.msra.mxu0 %v83_v37  ;;  %107 = vmatpush.bf16.msra.mxu1 %v85_v38  ;;  %v599_v47 = vld [vmem:[#allocation5 + $0x54] sm:$0xf0]  ;;  %v564_v48 = vld [vmem:[#allocation5 + $0xd0] sm:$0xf]  ;;  %v569_v51 = vor.u32 %v614_v45, %v566_v46  ;;  %v596_v52 = vld [vmem:[#allocation5 + $0x44] sm:$0xf] }
  0x1a   :  { %395 = vmatpush.bf16.msrb.mxu2 %v513_v35  ;;  %408 = vmatpush.bf16.msrb.mxu3 %v577_v36  ;;  %v615_v49 = vld [vmem:[#allocation5 + $0xd4] sm:$0xf0]  ;;  %v494_v53 = vld [vmem:[#allocation5 + $0x48] sm:$0xf0]  ;;  %v612_v54 = vld [vmem:[#allocation5 + $0xc4] sm:$0xf]  ;;  %v501_v56 = vor.u32 %v599_v47, %v500_v44 }
  0x1b   :  { %v558_v55 = vld [vmem:[#allocation5 + $0xc8] sm:$0xf0]  ;;  %v565_v57 = vor.u32 %v615_v49, %v564_v48  ;;  %v492_v58 = vld [vmem:[#allocation5 + $0x40] sm:$0xf]  ;;  %v597_v59 = vld [vmem:[#allocation5 + $0x44] sm:$0xf0]  ;;  %v497_v62 = vor.u32 %v596_v52, %v494_v53 }
  0x1c   :  { %446 = vmatmul.msk.bf16.vlgmr.msra.gmra.mxu0 %vm78_vm3, %v70_v39  ;;  %447 = vmatmul.msk.bf16.vlgmr.msra.gmra.mxu1 %vm78_vm3, %v70_v39  ;;  %v556_v60 = vld [vmem:[#allocation5 + $0xc0] sm:$0xf]  ;;  %v613_v61 = vld [vmem:[#allocation5 + $0xc4] sm:$0xf0]  ;;  %v561_v63 = vor.u32 %v612_v54, %v558_v55  ;;  %v594_v0 = vld [vmem:[#allocation5 + $0x34] sm:$0xf]  ;;  %v493_v4 = vor.u32 %v597_v59, %v492_v58 }
  0x1d   :  { %368 = vmatpush.bf16.msrb.mxu0 %v517_v28  ;;  %381 = vmatpush.bf16.msrb.mxu1 %v581_v29  ;;  %v486_v1 = vld [vmem:[#allocation5 + $0x38] sm:$0xf0]  ;;  %v610_v2 = vld [vmem:[#allocation5 + $0xb4] sm:$0xf]  ;;  %v557_v5 = vor.u32 %v613_v61, %v556_v60  ;;  %v484_v6 = vld [vmem:[#allocation5 + $0x30] sm:$0xf] }
  0x1e   :  { %396 = vmatpush.bf16.msrb.mxu2 %v505_v50  ;;  %409 = vmatpush.bf16.msrb.mxu3 %v569_v51  ;;  %v550_v3 = vld [vmem:[#allocation5 + $0xb8] sm:$0xf0]  ;;  %v595_v7 = vld [vmem:[#allocation5 + $0x34] sm:$0xf0]  ;;  %v548_v8 = vld [vmem:[#allocation5 + $0xb0] sm:$0xf]  ;;  %v489_v10 = vor.u32 %v594_v0, %v486_v1 }
  0x1f   :  { %v611_v9 = vld [vmem:[#allocation5 + $0xb4] sm:$0xf0]  ;;  %v553_v11 = vor.u32 %v610_v2, %v550_v3  ;;  %v592_v12 = vld [vmem:[#allocation5 + $0x24] sm:$0xf]  ;;  %v478_v13 = vld [vmem:[#allocation5 + $0x28] sm:$0xf0]  ;;  %v485_v16 = vor.u32 %v595_v7, %v484_v6 }
  0x20   :  { %v608_v14 = vld [vmem:[#allocation5 + $0xa4] sm:$0xf]  ;;  %v542_v15 = vld [vmem:[#allocation5 + $0xa8] sm:$0xf0]  ;;  %v549_v17 = vor.u32 %v611_v9, %v548_v8  ;;  %v476_v18 = vld [vmem:[#allocation5 + $0x20] sm:$0xf]  ;;  %v481_v22 = vor.u32 %v592_v12, %v478_v13 }
  0x21   :  { %369 = vmatpush.bf16.msrb.mxu0 %v509_v42  ;;  %382 = vmatpush.bf16.msrb.mxu1 %v573_v43  ;;  %v593_v19 = vld [vmem:[#allocation5 + $0x24] sm:$0xf0]  ;;  %v540_v20 = vld [vmem:[#allocation5 + $0xa0] sm:$0xf]  ;;  %v545_v23 = vor.u32 %v608_v14, %v542_v15  ;;  %v468_v26 = vld [vmem:[#allocation5 + $0x10] sm:$0xf] }
  0x22   :  { %397 = vmatpush.bf16.msrb.mxu2 %v497_v62  ;;  %410 = vmatpush.bf16.msrb.mxu3 %v561_v63  ;;  %v609_v21 = vld [vmem:[#allocation5 + $0xa4] sm:$0xf0]  ;;  %v477_v24 = vor.u32 %v593_v19, %v476_v18  ;;  %v591_v27 = vld [vmem:[#allocation5 + $0x14] sm:$0xf0]  ;;  %v532_v29 = vld [vmem:[#allocation5 + $0x90] sm:$0xf] }
  0x23   :  { %v541_v25 = vor.u32 %v609_v21, %v540_v20  ;;  %v469_v28 = vor.u32 %v591_v27, %v468_v26  ;;  %v607_v30 = vld [vmem:[#allocation5 + $0x94] sm:$0xf0]  ;;  %v590_v32 = vld [vmem:[#allocation5 + $0x14] sm:$0xf]  ;;  %v470_v33 = vld [vmem:[#allocation5 + $0x18] sm:$0xf0] }
  0x24   :  { %v533_v31 = vor.u32 %v607_v30, %v532_v29  ;;  %v473_v34 = vor.u32 %v590_v32, %v470_v33  ;;  %v606_v35 = vld [vmem:[#allocation5 + $0x94] sm:$0xf]  ;;  %v534_v36 = vld [vmem:[#allocation5 + $0x98] sm:$0xf0]  ;;  %v460_v38 = vld [vmem:[#allocation5] sm:$0xf] }
  0x25   :  { %370 = vmatpush.bf16.msrb.mxu0 %v501_v56  ;;  %383 = vmatpush.bf16.msrb.mxu1 %v565_v57  ;;  %v537_v37 = vor.u32 %v606_v35, %v534_v36  ;;  %v589_v39 = vld [vmem:[#allocation5 + $0x4] sm:$0xf0]  ;;  %v524_v40 = vld [vmem:[#allocation5 + $0x80] sm:$0xf]  ;;  %v588_v43 = vld [vmem:[#allocation5 + $0x4] sm:$0xf] }
  0x26   :  { %398 = vmatpush.bf16.msrb.mxu2 %v489_v10  ;;  %411 = vmatpush.bf16.msrb.mxu3 %v553_v11  ;;  %v461_v41 = vor.u32 %v589_v39, %v460_v38  ;;  %v605_v42 = vld [vmem:[#allocation5 + $0x84] sm:$0xf0]  ;;  %v462_v44 = vld [vmem:[#allocation5 + $0x8] sm:$0xf0]  ;;  %v604_v47 = vld [vmem:[#allocation5 + $0x84] sm:$0xf] }
  0x27   :  { %v525_v45 = vor.u32 %v605_v42, %v524_v40  ;;  %v465_v46 = vor.u32 %v588_v43, %v462_v44  ;;  %v526_v48 = vld [vmem:[#allocation5 + $0x88] sm:$0xf0]  ;;  %v158_v50 = vld [vmem:[%s773_s4] sm:$0x3]  ;;  %vm438_vm4 = vcmask 7168  }
  0x28   :  { %v529_v49 = vor.u32 %v604_v47, %v526_v48  ;;  %v160_v52 = vperm.slane %v158_v50, 0  ;;  %v161_v55 = vperm.slane %v158_v50, 1  ;;  %v422_v13 = vld [vmem:[%s776_s7] sm:$0x3] }
  0x29   :  { %371 = vmatpush.bf16.msrb.mxu0 %v493_v4  ;;  %384 = vmatpush.bf16.msrb.mxu1 %v557_v5  ;;  %v202_v5 = vld [vmem:[%s775_s6] sm:$0x3]  ;;  %v424_v20 = vperm.slane %v422_v13, 0  ;;  %v425_v21 = vperm.slane %v422_v13, 1 }
  0x2a   :  { %399 = vmatpush.bf16.msrb.mxu2 %v481_v22  ;;  %412 = vmatpush.bf16.msrb.mxu3 %v545_v23  ;;  %v204_v6 = vperm.slane %v202_v5, 0  ;;  %v205_v10 = vperm.slane %v202_v5, 1 }
  0x2d   :  { %372 = vmatpush.bf16.msrb.mxu0 %v485_v16  ;;  %385 = vmatpush.bf16.msrb.mxu1 %v549_v17 }
  0x2e   :  { %400 = vmatpush.bf16.msrb.mxu2 %v473_v34  ;;  %413 = vmatpush.bf16.msrb.mxu3 %v537_v37 }
  0x31   :  { %373 = vmatpush.bf16.msrb.mxu0 %v477_v24  ;;  %386 = vmatpush.bf16.msrb.mxu1 %v541_v25 }
  0x32   :  { %401 = vmatpush.bf16.msrb.mxu2 %v465_v46  ;;  %414 = vmatpush.bf16.msrb.mxu3 %v529_v49 }
  0x35   :  { %374 = vmatpush.bf16.msrb.mxu0 %v469_v28  ;;  %387 = vmatpush.bf16.msrb.mxu1 %v533_v31  ;;  %v624_v28 = vld [vmem:[#allocation2] ss:$0 sm:$0xff] }
  0x39   :  { %375 = vmatpush.bf16.msrb.mxu0 %v461_v41  ;;  %388 = vmatpush.bf16.msrb.mxu1 %v525_v45 }
  0x98   :  { %v141_v51 = vpop.f32.mrf.mxu2  ;;  %v154_v57 = vpop.f32.mrf.mxu3 }
  0x99   :  { %v96_v53 = vpop.f32.mrf.mxu0  ;;  %v109_v54 = vpop.f32.mrf.mxu1 }
  0x9a   :  { %v142_v56 = vadd.f32 %v141_v51, %v96_v53  ;;  %v155_v58 = vadd.f32 %v154_v57, %v109_v54 }
  0x9c   :  { %v164_v59 = vadd.f32 %v160_v52, %v142_v56  ;;  %v165_v60 = vadd.f32 %v161_v55, %v155_v58 }
  0x9e   :  { %v166_v61 = vmax.f32 %v164_v59, 0.0  ;;  %v167_v62 = vmax.f32 %v165_v60, 0.0 }
  0xa0   :  { %v168_v63 = vpack.c.bf16 %v166_v61, %v166_v61  ;;  %v143_v0 = vpop.f32.mrf.mxu2  ;;  %v169_v1 = vpack.c.bf16 %v167_v62, %v167_v62  ;;  %v156_v4 = vpop.f32.mrf.mxu3 }
  0xa1   :  { %v98_v2 = vpop.f32.mrf.mxu0  ;;  %v111_v3 = vpop.f32.mrf.mxu1 }
  0xa2   :  { %376 = vmatmul.bf16.vlgmr.msrb.gmra.mxu0 %v168_v63  ;;  %402 = vmatmul.bf16.vlgmr.msrb.gmra.mxu2 %v168_v63 }
  0xa3   :  { %389 = vmatmul.bf16.vlgmr.msrb.gmra.mxu1 %v169_v1  ;;  %415 = vmatmul.bf16.vlgmr.msrb.gmra.mxu3 %v169_v1 }
 0x11f   :  { %v377_v7 = vpop.f32.mrf.mxu0 }
 0x120   :  { %v378_v8 = vadd.f32 %v377_v7, %v204_v6  ;;  %v390_v9 = vpop.f32.mrf.mxu1 }
 0x122   :  { %v391_v11 = vadd.f32 %v390_v9, %v378_v8 }
 0x124   :  { %v420_v17 = vmax.f32 %v391_v11, 0.0 }
 0x125   :  { %v403_v12 = vpop.f32.mrf.mxu2 }
 0x126   :  { %v404_v14 = vadd.f32 %v403_v12, %v205_v10  ;;  %v416_v15 = vpop.f32.mrf.mxu3  ;;  %v428_v23 = vmul.f32 %v424_v20, %v420_v17 }
 0x127   :  { %v379_v16 = vpop.f32.mrf.mxu0 }
 0x128   :  { %v417_v18 = vadd.f32 %v416_v15, %v404_v14  ;;  %v392_v19 = vpop.f32.mrf.mxu1 }
 0x12a   :  { %v421_v22 = vmax.f32 %v417_v18, 0.0 }
 0x12c   :  { %v429_v24 = vmul.f32 %v425_v21, %v421_v22 }
 0x12d   :  { %v405_v25 = vpop.f32.mrf.mxu2 }
 0x12e   :  { %v418_v26 = vpop.f32.mrf.mxu3  ;;  %v430_v27 = vadd.f32 %v429_v24, %v428_v23 }
 0x130   :  { %431 = vadd.xlane.f32.xlu0 %v430_v27 }
 0x1a3   :  { %v432_v29 = vpop.xlane.xlu0 %431 }
 0x1a4   :  { %v437_v30 = vadd.f32 %v624_v28, %v432_v29 }
 0x1a6   :  { %439 = vst.msk [vmem:[%s778_s9] sm:$0xff] %vm438_vm4, %v437_v30 }
 0x1a7   :  { %444 = vsyncpa [#allocation4], 1 }
 0x1a8   :  { %445 = vsyncpa [#allocation6], 1 }

</bundles_post_ra>
